<compile_context>
chip_gen: v5e
topology: v5e:2x2
jax: 0.10.0
libtpu: 0.0.40
codegen_flags: <defaults>
</compile_context>

<pallas_src>
import math
import jax
import jax.numpy as jnp
from jax.experimental import pallas as pl
from jax.experimental.pallas import tpu as pltpu


# --------------------------------------------------------------------------
# Kernel
# --------------------------------------------------------------------------
def _make_kernel(nhead: int, d_model: int, dim_ff: int, block_b: int,
                 seq_len: int, *, fused_relayout: bool, eps: float = 1e-5):
    H, D, F, Bb, T = nhead, d_model, dim_ff, block_b, seq_len
    hd = D // H
    G = Bb * H  # flattened (batch, head) axis for head-batched attention dots

    def kernel(x_ref, w_in_ref, b_in_ref, w_out_ref, b_out_ref,
               w1_ref, b1_ref, w2_ref, b2_ref,
               g1_ref, beta1_ref, g2_ref, beta2_ref,
               o_ref):
        # x is streamed as bf16 (halved DMA); upcast once for f32 residual/LN.
        x_bf = x_ref[...].reshape(Bb * T, D)            # bf16 (rows, D)
        x = x_bf.astype(jnp.float32)

        # ---- fused qkv projection: bf16 operands, f32 MXU accumulation.
        # w_in is pre-transposed to (D, 3D) with the 1/sqrt(hd) query scale
        # folded in, so there is no in-kernel transpose or q scaling.
        qkv = jnp.dot(x_bf, w_in_ref[...],
                      preferred_element_type=jnp.float32) + b_in_ref[...]

        if fused_relayout:
            # ---- single transpose-based head relayout (no per-head lane
            # slices / concats).  f32 so the second-minor regroups are
            # 8-row aligned (requires hd % 8 == 0).  g = b*H + h.
            qkv_t = jnp.swapaxes(qkv.reshape(Bb, T, 3 * D), -1, -2)  # (Bb,3D,T)
            q_t = qkv_t[:, 0 * D:1 * D, :]                           # (Bb,D,T)
            k_t = qkv_t[:, 1 * D:2 * D, :]
            v_t = qkv_t[:, 2 * D:3 * D, :]

            def heads_td(a_t):                  # (Bb, D, T) -> (G, T, hd)
                return jnp.swapaxes(a_t.reshape(G, hd, T), -1, -2)

            qh = heads_td(q_t).astype(jnp.bfloat16)                  # (G,T,hd)
            vh = heads_td(v_t).astype(jnp.bfloat16)                  # (G,T,hd)
            kh_t = k_t.reshape(G, hd, T).astype(jnp.bfloat16)        # (G,hd,T)
            s = jnp.einsum("gqd,gdk->gqk", qh, kh_t,
                           preferred_element_type=jnp.float32)       # (G,T,T)
        else:
            # Fallback variant (identical maths / resources): per-head lane
            # slices + leading-axis concat.  g = h*Bb + b.
            q3 = qkv[:, 0 * D:1 * D].reshape(Bb, T, D)
            k3 = qkv[:, 1 * D:2 * D].reshape(Bb, T, D)
            v3 = qkv[:, 2 * D:3 * D].reshape(Bb, T, D)

            def heads_td(a3):                   # (Bb, T, D) -> (G, T, hd)
                return jnp.concatenate(
                    [a3[:, :, h * hd:(h + 1) * hd] for h in range(H)], axis=0
                ).astype(jnp.bfloat16)

            qh, kh, vh = heads_td(q3), heads_td(k3), heads_td(v3)
            s = jnp.einsum("gqd,gkd->gqk", qh, kh,
                           preferred_element_type=jnp.float32)       # (G,T,T)

        # ---- softmax with normalisation deferred until after PV:
        # G*T*hd multiplies instead of G*T*T.  Max-subtraction keeps the bf16
        # cast of p well-conditioned (values in [0, 1]).
        m = jnp.max(s, axis=-1, keepdims=True)
        p = jnp.exp(s - m)
        l = jnp.sum(p, axis=-1, keepdims=True)                       # (G,T,1)
        o = jnp.einsum("gqk,gkd->gqd", p.astype(jnp.bfloat16), vh,
                       preferred_element_type=jnp.float32)           # (G,T,hd)
        # approx reciprocal runs on the EUP slot (~free); ~1e-3 rel error,
        # covered by the test tolerance.
        o = o * pl.reciprocal(l, approx=True)

        if fused_relayout:
            # inverse relayout: (G, T, hd) -> (Bb*T, D)
            attn = jnp.swapaxes(
                jnp.swapaxes(o, -1, -2).reshape(Bb, D, T), -1, -2
            ).reshape(Bb * T, D)
        else:
            attn = jnp.concatenate(
                [o[h * Bb:(h + 1) * Bb] for h in range(H)], axis=-1
            ).reshape(Bb * T, D)

        # ---- output projection (weight pre-transposed to (D, D)) ----
        attn = jnp.dot(attn.astype(jnp.bfloat16), w_out_ref[...],
                       preferred_element_type=jnp.float32) + b_out_ref[...]

        # ---- residual + LayerNorm 1 (f32) ----
        y = x + attn
        mu = jnp.mean(y, axis=-1, keepdims=True)
        var = jnp.mean((y - mu) * (y - mu), axis=-1, keepdims=True)
        y = (y - mu) * jax.lax.rsqrt(var + eps)
        y = y * g1_ref[...] + beta1_ref[...]

        # ---- feed-forward: linear1 -> relu -> linear2 (pre-transposed) ----
        h1 = jnp.dot(y.astype(jnp.bfloat16), w1_ref[...],
                     preferred_element_type=jnp.float32) + b1_ref[...]
        h1 = jnp.maximum(h1, 0.0)
        h2 = jnp.dot(h1.astype(jnp.bfloat16), w2_ref[...],
                     preferred_element_type=jnp.float32) + b2_ref[...]

        # ---- residual + LayerNorm 2 (f32) ----
        z = y + h2
        mu2 = jnp.mean(z, axis=-1, keepdims=True)
        var2 = jnp.mean((z - mu2) * (z - mu2), axis=-1, keepdims=True)
        z = (z - mu2) * jax.lax.rsqrt(var2 + eps)
        z = z * g2_ref[...] + beta2_ref[...]

        o_ref[...] = z.reshape(Bb, T, D).astype(o_ref.dtype)

    return kernel


# --------------------------------------------------------------------------
# Parameter prep (one-time, outside the kernel)
# --------------------------------------------------------------------------
def prepare_params(params, *, nhead):
    """Fold the 1/sqrt(head_dim) query scale into w_in/b_in, pre-transpose
    every weight so the kernel computes x @ W directly, and pre-cast the
    matmul weights to bf16 (f32 MXU accumulation in-kernel).  Biases and
    LayerNorm params stay f32."""
    D = params["w_out"].shape[0]
    hd = D // nhead
    scale = 1.0 / math.sqrt(hd)
    w_in = params["w_in"].at[:D, :].multiply(scale)      # scale Q rows
    b_in = params["b_in"].at[:, :D].multiply(scale)      # scale Q bias
    f32, bf16 = jnp.float32, jnp.bfloat16
    return {
        "w_in_t":  jnp.asarray(w_in.T, bf16),                  # (D, 3D)
        "b_in":    jnp.asarray(b_in, f32),                     # (1, 3D)
        "w_out_t": jnp.asarray(params["w_out"].T, bf16),       # (D, D)
        "b_out":   jnp.asarray(params["b_out"], f32),          # (1, D)
        "w1_t":    jnp.asarray(params["w1"].T, bf16),          # (D, F)
        "b1":      jnp.asarray(params["b1"], f32),             # (1, F)
        "w2_t":    jnp.asarray(params["w2"].T, bf16),          # (F, D)
        "b2":      jnp.asarray(params["b2"], f32),             # (1, D)
        "g1":      jnp.asarray(params["g1"], f32),
        "beta1":   jnp.asarray(params["beta1"], f32),
        "g2":      jnp.asarray(params["g2"], f32),
        "beta2":   jnp.asarray(params["beta2"], f32),
    }


# --------------------------------------------------------------------------
# Generation-aware configuration heuristics
# --------------------------------------------------------------------------
def _tpu_generation_info():
    """(physical VMEM bytes per core, chip has >= 2 TensorCores).  Conservative
    defaults (64 MiB, single core) if introspection is unavailable; this only
    affects tuning heuristics, never correctness."""
    vmem_cap = 64 * 1024 * 1024
    two_cores = False
    try:
        info = pltpu.get_tpu_info()
        vmem_cap = int(getattr(info, "vmem_capacity_bytes", vmem_cap))
    except Exception:       # introspection unavailable -> keep defaults
        pass
    try:
        dev = jax.devices()[0]
        kind = str(getattr(dev, "device_kind", "")).lower()
        two_cores = ("v7" in kind) or int(getattr(dev, "num_cores", 1) or 1) >= 2
    except Exception:
        pass
    return vmem_cap, two_cores


def _estimate_vmem_bytes(block_b, T, D, F, H):
    """Rough per-step VMEM footprint: pipeline buffers (x in / out, double
    buffered), double-buffered weights, and the large live intermediates
    (qkv + transpose, head stacks, (G,T,T) scores, FFN hidden).  Intentionally
    conservative — over-estimating only shrinks block_b."""
    rows = block_b * T
    G = block_b * H
    bf2, f4 = 2, 4
    stream = 2 * rows * D * bf2 + 2 * rows * D * f4
    weights = 2 * bf2 * (D * 3 * D + D * D + D * F + F * D)
    weights += 2 * f4 * (3 * D + F + 6 * D)
    inter = (2 * rows * 3 * D * f4        # qkv + its transposed copy (f32)
             + 3 * rows * D * bf2         # q/k/v head stacks (bf16)
             + G * T * T * (f4 + bf2)     # scores (f32) + exp weights (bf16)
             + 3 * rows * D * f4          # attention out, y, z
             + rows * F * f4)             # FFN hidden
    return stream + weights + inter


def _pick_block_b(B, T, D, F, H, *, vmem_budget_bytes, two_cores,
                  max_rows=1024):
    """Largest divisor of B whose per-step footprint fits the VMEM budget and
    keeps block_b*T <= max_rows.  On two-TensorCore chips (v7x) prefer block_b
    values that give an even number of grid steps so both cores stay busy; on
    single-core chips no minimum grid length is imposed."""
    divisors = [d for d in range(1, B + 1) if B % d == 0]
    fits = [d for d in divisors
            if d * T <= max_rows
            and _estimate_vmem_bytes(d, T, D, F, H) <= vmem_budget_bytes]
    if not fits:
        fits = [1]
    if two_cores:
        even = [d for d in fits if (B // d) >= 2 and (B // d) % 2 == 0]
        if even:
            return max(even)
    return max(fits)


# --------------------------------------------------------------------------
# Wrapper
# --------------------------------------------------------------------------
def global_han_layer(src_q, prepped, *, nhead, block_b=None,
                     head_relayout="auto"):
    """src_q: (B, T, d_model) float32; prepped: output of prepare_params().

    NOTE: for best MXU / lane utilisation, d_model, 3*d_model and
    dim_feedforward should be multiples of 128 and head_dim >= 64; the kernel
    remains correct for smaller (demo) sizes.
    """
    B, T, D = src_q.shape
    F = prepped["w1_t"].shape[1]
    assert D % nhead == 0, "d_model must be divisible by nhead"
    hd = D // nhead
    # The fused (transpose-based) head relayout regroups the f32 sublane dim
    # in chunks of hd, so it needs hd % 8 == 0; otherwise use the concat path.
    can_fuse = (hd % 8 == 0)

    vmem_cap, two_cores = _tpu_generation_info()
    # Generation-aware scoped-VMEM limit: ~96-100 MiB on 128 MiB parts
    # (v5e / v6e), ~48 MiB on 64 MiB-per-core parts (v7x).
    vmem_limit = int(min(vmem_cap * 3 // 4, 100 * 1024 * 1024))

    if block_b is None:
        block_b = _pick_block_b(B, T, D, F, nhead,
                                vmem_budget_bytes=int(vmem_limit * 0.7),
                                two_cores=two_cores)
    assert B % block_b == 0, "block_b must divide the batch size"
    grid = (B // block_b,)

    weight_keys = ("w_in_t", "b_in", "w_out_t", "b_out",
                   "w1_t", "b1", "w2_t", "b2",
                   "g1", "beta1", "g2", "beta2")
    weights = [prepped[k] for k in weight_keys]

    # Stream the activation as bf16: halves HBM->VMEM bytes for the only
    # operand that is re-DMA'd every grid step.
    x_bf = src_q.astype(jnp.bfloat16)

    def run(fused):
        kernel = _make_kernel(nhead, D, F, block_b, T, fused_relayout=fused)
        in_specs = [pl.BlockSpec((block_b, T, D), lambda b: (b, 0, 0))]
        # Weights: full-array blocks with constant index_maps.  Pallas does
        # not re-copy a block whose index is unchanged, so the only cost of
        # default double-buffering is the VMEM reservation, which the block_b
        # budget above accounts for.
        in_specs += [pl.BlockSpec(w.shape, lambda b, n=len(w.shape): (0,) * n)
                     for w in weights]
        out = pl.pallas_call(
            kernel,
            out_shape=jax.ShapeDtypeStruct((B, T, D), jnp.float32),
            grid_spec=pltpu.PrefetchScalarGridSpec(
                num_scalar_prefetch=0,
                grid=grid,
                in_specs=in_specs,
                out_specs=pl.BlockSpec((block_b, T, D), lambda b: (b, 0, 0)),
            ),
            compiler_params=pltpu.CompilerParams(
                dimension_semantics=("parallel",),
                vmem_limit_bytes=vmem_limit,
            ),
        )(x_bf, *weights)
        return jax.block_until_ready(out)

    if head_relayout == "concat" or not can_fuse:
        return run(False)
    if head_relayout == "fused":
        return run(True)
    # "auto": prefer the fused relayout; fall back to the functionally
    # identical concat variant (same block_b / buffering / vmem_limit, so no
    # silent resource change) only on Mosaic lowering/compile failures of the
    # transpose/reshape path.  Unrelated persistent errors re-surface from the
    # fallback run.
    try:
        return run(True)
    except (NotImplementedError, pltpu.LoweringException, RuntimeError):
        return run(False)


# --------------------------------------------------------------------------
# Pure-JAX reference (correctness check)
# --------------------------------------------------------------------------
def reference(src_q, params, *, nhead):
    B, T, D = src_q.shape
    hd = D // nhead
    x = src_q.astype(jnp.float32)
    qkv = jnp.einsum("btd,ed->bte", x, params["w_in"]) + params["b_in"][0]
    q, k, v = qkv[..., :D], qkv[..., D:2 * D], qkv[..., 2 * D:]
    q = q.reshape(B, T, nhead, hd).transpose(0, 2, 1, 3) / math.sqrt(hd)
    k = k.reshape(B, T, nhead, hd).transpose(0, 2, 1, 3)
    v = v.reshape(B, T, nhead, hd).transpose(0, 2, 1, 3)
    s = jnp.einsum("bhtd,bhsd->bhts", q, k)
    p = jax.nn.softmax(s, axis=-1)
    a = jnp.einsum("bhts,bhsd->bhtd", p, v).transpose(0, 2, 1, 3).reshape(B, T, D)
    a = jnp.einsum("btd,ed->bte", a, params["w_out"]) + params["b_out"][0]

    def ln(y, g, b):
        mu = jnp.mean(y, axis=-1, keepdims=True)
        var = jnp.mean((y - mu) ** 2, axis=-1, keepdims=True)
        return (y - mu) / jnp.sqrt(var + 1e-5) * g[0] + b[0]

    y = ln(x + a, params["g1"], params["beta1"])
    h = jnp.maximum(jnp.einsum("btd,fd->btf", y, params["w1"]) + params["b1"][0], 0.0)
    h = jnp.einsum("btf,df->btd", h, params["w2"]) + params["b2"][0]
    return ln(y + h, params["g2"], params["beta2"])


def init_params(key, d_model, nhead, dim_ff):
    ks = jax.random.split(key, 8)
    s = 0.05
    return {
        "w_in":  (jax.random.normal(ks[0], (3 * d_model, d_model), jnp.float32) * s),
        "b_in":  (jax.random.normal(ks[1], (1, 3 * d_model), jnp.float32) * s),
        "w_out": (jax.random.normal(ks[2], (d_model, d_model), jnp.float32) * s),
        "b_out": (jax.random.normal(ks[3], (1, d_model), jnp.float32) * s),
        "w1":    (jax.random.normal(ks[4], (dim_ff, d_model), jnp.float32) * s),
        "b1":    (jax.random.normal(ks[5], (1, dim_ff), jnp.float32) * s),
        "w2":    (jax.random.normal(ks[6], (d_model, dim_ff), jnp.float32) * s),
        "b2":    (jax.random.normal(ks[7], (1, d_model), jnp.float32) * s),
        "g1":    jnp.ones((1, d_model), jnp.float32),
        "beta1": jnp.zeros((1, d_model), jnp.float32),
        "g2":    jnp.ones((1, d_model), jnp.float32),
        "beta2": jnp.zeros((1, d_model), jnp.float32),
    }


if __name__ == "__main__":
    B, T, d_model, nhead, dim_ff = 2, 8, 32, 4, 64
    key = jax.random.PRNGKey(0)
    k_x, k_v, k_p = jax.random.split(key, 3)
    src_q = jax.random.normal(k_x, (B, T, d_model), jnp.float32)
    src_v = jax.random.normal(k_v, (B, T, d_model), jnp.float32)  # unused by forward
    params = init_params(k_p, d_model, nhead, dim_ff)
    prepped = prepare_params(params, nhead=nhead)

    out = global_han_layer(src_q, prepped, nhead=nhead)
    out = jax.block_until_ready(out)

    ref = reference(src_q, params, nhead=nhead)
    assert out.shape == (B, T, d_model)
    # bf16 streamed input + bf16 matmul weights (f32 accumulation) and an
    # approx softmax reciprocal -> loosened tolerance vs the f32 reference.
    assert jnp.allclose(out, ref, atol=3e-2, rtol=3e-2), "mismatch vs reference"
    print("KERNEL_OK")
</pallas_src>

<mosaic_0001>
module attributes {stable_mosaic.version = 11 : i64} {
  func.func @kernel(%arg0: i32, %arg1: memref<2x8x32xbf16, #tpu.memory_space<vmem>>, %arg2: memref<32x96xbf16, #tpu.memory_space<vmem>>, %arg3: memref<1x96xf32, #tpu.memory_space<vmem>>, %arg4: memref<32x32xbf16, #tpu.memory_space<vmem>>, %arg5: memref<1x32xf32, #tpu.memory_space<vmem>>, %arg6: memref<32x64xbf16, #tpu.memory_space<vmem>>, %arg7: memref<1x64xf32, #tpu.memory_space<vmem>>, %arg8: memref<64x32xbf16, #tpu.memory_space<vmem>>, %arg9: memref<1x32xf32, #tpu.memory_space<vmem>>, %arg10: memref<1x32xf32, #tpu.memory_space<vmem>>, %arg11: memref<1x32xf32, #tpu.memory_space<vmem>>, %arg12: memref<1x32xf32, #tpu.memory_space<vmem>>, %arg13: memref<1x32xf32, #tpu.memory_space<vmem>>, %arg14: memref<2x8x32xf32, #tpu.memory_space<vmem>>) attributes {dimension_semantics = [#tpu.dimension_semantics<parallel>], iteration_bounds = array<i64: 1>, scalar_prefetch = 0 : i64, scratch_operands = 0 : i64, tpu.core_type = #tpu.core_type<tc>, window_params = [{transform_indices = @transform_0, window_bounds = array<i64: 2, 8, 32>}, {pipeline_mode = #tpu.pipeline_mode<synchronous>, transform_indices = @transform_1, window_bounds = array<i64: 32, 96>}, {pipeline_mode = #tpu.pipeline_mode<synchronous>, transform_indices = @transform_2, window_bounds = array<i64: 1, 96>}, {pipeline_mode = #tpu.pipeline_mode<synchronous>, transform_indices = @transform_3, window_bounds = array<i64: 32, 32>}, {pipeline_mode = #tpu.pipeline_mode<synchronous>, transform_indices = @transform_4, window_bounds = array<i64: 1, 32>}, {pipeline_mode = #tpu.pipeline_mode<synchronous>, transform_indices = @transform_5, window_bounds = array<i64: 32, 64>}, {pipeline_mode = #tpu.pipeline_mode<synchronous>, transform_indices = @transform_6, window_bounds = array<i64: 1, 64>}, {pipeline_mode = #tpu.pipeline_mode<synchronous>, transform_indices = @transform_7, window_bounds = array<i64: 64, 32>}, {pipeline_mode = #tpu.pipeline_mode<synchronous>, transform_indices = @transform_8, window_bounds = array<i64: 1, 32>}, {pipeline_mode = #tpu.pipeline_mode<synchronous>, transform_indices = @transform_9, window_bounds = array<i64: 1, 32>}, {pipeline_mode = #tpu.pipeline_mode<synchronous>, transform_indices = @transform_10, window_bounds = array<i64: 1, 32>}, {pipeline_mode = #tpu.pipeline_mode<synchronous>, transform_indices = @transform_11, window_bounds = array<i64: 1, 32>}, {pipeline_mode = #tpu.pipeline_mode<synchronous>, transform_indices = @transform_12, window_bounds = array<i64: 1, 32>}, {transform_indices = @transform_13, window_bounds = array<i64: 2, 8, 32>}]} {
    %c0 = arith.constant 0 : index
    %c0_0 = arith.constant 0 : index
    %c0_1 = arith.constant 0 : index
    %0 = vector.load %arg1[%c0, %c0_0, %c0_1] : memref<2x8x32xbf16, #tpu.memory_space<vmem>>, vector<2x8x32xbf16>
    %1 = vector.shape_cast %0 : vector<2x8x32xbf16> to vector<16x32xbf16>
    %2 = arith.extf %1 : vector<16x32xbf16> to vector<16x32xf32>
    %c0_2 = arith.constant 0 : index
    %c0_3 = arith.constant 0 : index
    %3 = vector.load %arg2[%c0_2, %c0_3] : memref<32x96xbf16, #tpu.memory_space<vmem>>, vector<32x96xbf16>
    %cst = arith.constant dense<0.000000e+00> : vector<16x96xf32>
    %4 = tpu.matmul %1, %3, %cst {dimension_numbers = #tpu.dot_dimension_numbers<[1], [0], [0], [1], [0, 0, 1, 1], [], []>} : vector<16x32xbf16>, vector<32x96xbf16>, vector<16x96xf32> -> vector<16x96xf32>
    %c0_4 = arith.constant 0 : index
    %c0_5 = arith.constant 0 : index
    %5 = vector.load %arg3[%c0_4, %c0_5] : memref<1x96xf32, #tpu.memory_space<vmem>>, vector<1x96xf32>
    %6 = vector.broadcast %5 : vector<1x96xf32> to vector<16x96xf32>
    %7 = arith.addf %4, %6 : vector<16x96xf32>
    %8 = vector.shape_cast %7 : vector<16x96xf32> to vector<2x8x96xf32>
    %9 = tpu.transpose %8, [0, 2, 1] : vector<2x8x96xf32> -> vector<2x96x8xf32>
    %10 = vector.extract_strided_slice %9 {offsets = [0, 0, 0], sizes = [2, 32, 8], strides = [1, 1, 1]} : vector<2x96x8xf32> to vector<2x32x8xf32>
    %11 = vector.extract_strided_slice %9 {offsets = [0, 32, 0], sizes = [2, 32, 8], strides = [1, 1, 1]} : vector<2x96x8xf32> to vector<2x32x8xf32>
    %12 = vector.extract_strided_slice %9 {offsets = [0, 64, 0], sizes = [2, 32, 8], strides = [1, 1, 1]} : vector<2x96x8xf32> to vector<2x32x8xf32>
    %13 = vector.shape_cast %10 : vector<2x32x8xf32> to vector<8x8x8xf32>
    %14 = tpu.transpose %13, [0, 2, 1] : vector<8x8x8xf32> -> vector<8x8x8xf32>
    %15 = arith.truncf %14 : vector<8x8x8xf32> to vector<8x8x8xbf16>
    %16 = vector.shape_cast %12 : vector<2x32x8xf32> to vector<8x8x8xf32>
    %17 = tpu.transpose %16, [0, 2, 1] : vector<8x8x8xf32> -> vector<8x8x8xf32>
    %18 = arith.truncf %17 : vector<8x8x8xf32> to vector<8x8x8xbf16>
    %19 = vector.shape_cast %11 : vector<2x32x8xf32> to vector<8x8x8xf32>
    %20 = arith.truncf %19 : vector<8x8x8xf32> to vector<8x8x8xbf16>
    "tpu.trace_start"() <{level = 10 : i32, message = "gqd,gdk->gqk"}> : () -> ()
    %cst_6 = arith.constant dense<0.000000e+00> : vector<8x8x8xf32>
    %21 = tpu.matmul %15, %20, %cst_6 {dimension_numbers = #tpu.dot_dimension_numbers<[2], [1], [1], [2], [0, 0, 0, 1, 1, 2], [0], [0]>} : vector<8x8x8xbf16>, vector<8x8x8xbf16>, vector<8x8x8xf32> -> vector<8x8x8xf32>
    "tpu.trace_stop"() : () -> ()
    %cst_7 = arith.constant dense<0xFF800000> : vector<8x8xf32>
    %22 = vector.multi_reduction <maximumf>, %21, %cst_7 [2] : vector<8x8x8xf32> to vector<8x8xf32>
    %23 = vector.shape_cast %22 : vector<8x8xf32> to vector<8x8x1xf32>
    %24 = vector.broadcast %23 : vector<8x8x1xf32> to vector<8x8x8xf32>
    %25 = arith.subf %21, %24 : vector<8x8x8xf32>
    %26 = math.exp %25 : vector<8x8x8xf32>
    %cst_8 = arith.constant dense<0.000000e+00> : vector<8x8xf32>
    %27 = vector.multi_reduction <add>, %26, %cst_8 [2] : vector<8x8x8xf32> to vector<8x8xf32>
    %28 = vector.shape_cast %27 : vector<8x8xf32> to vector<8x8x1xf32>
    %29 = arith.truncf %26 : vector<8x8x8xf32> to vector<8x8x8xbf16>
    "tpu.trace_start"() <{level = 10 : i32, message = "gqk,gkd->gqd"}> : () -> ()
    %cst_9 = arith.constant dense<0.000000e+00> : vector<8x8x8xf32>
    %30 = tpu.matmul %29, %18, %cst_9 {dimension_numbers = #tpu.dot_dimension_numbers<[2], [1], [1], [2], [0, 0, 0, 1, 1, 2], [0], [0]>} : vector<8x8x8xbf16>, vector<8x8x8xbf16>, vector<8x8x8xf32> -> vector<8x8x8xf32>
    "tpu.trace_stop"() : () -> ()
    %31 = tpu.reciprocal %28 {approx = true} : vector<8x8x1xf32> -> vector<8x8x1xf32>
    %32 = vector.broadcast %31 : vector<8x8x1xf32> to vector<8x8x8xf32>
    %33 = arith.mulf %30, %32 : vector<8x8x8xf32>
    %34 = tpu.transpose %33, [0, 2, 1] : vector<8x8x8xf32> -> vector<8x8x8xf32>
    %35 = vector.shape_cast %34 : vector<8x8x8xf32> to vector<2x32x8xf32>
    %36 = tpu.transpose %35, [0, 2, 1] : vector<2x32x8xf32> -> vector<2x8x32xf32>
    %37 = vector.shape_cast %36 : vector<2x8x32xf32> to vector<16x32xf32>
    %38 = arith.truncf %37 : vector<16x32xf32> to vector<16x32xbf16>
    %c0_10 = arith.constant 0 : index
    %c0_11 = arith.constant 0 : index
    %39 = vector.load %arg4[%c0_10, %c0_11] : memref<32x32xbf16, #tpu.memory_space<vmem>>, vector<32x32xbf16>
    %cst_12 = arith.constant dense<0.000000e+00> : vector<16x32xf32>
    %40 = tpu.matmul %38, %39, %cst_12 {dimension_numbers = #tpu.dot_dimension_numbers<[1], [0], [0], [1], [0, 0, 1, 1], [], []>} : vector<16x32xbf16>, vector<32x32xbf16>, vector<16x32xf32> -> vector<16x32xf32>
    %c0_13 = arith.constant 0 : index
    %c0_14 = arith.constant 0 : index
    %41 = vector.load %arg5[%c0_13, %c0_14] : memref<1x32xf32, #tpu.memory_space<vmem>>, vector<1x32xf32>
    %42 = vector.broadcast %41 : vector<1x32xf32> to vector<16x32xf32>
    %43 = arith.addf %40, %42 : vector<16x32xf32>
    %44 = arith.addf %2, %43 : vector<16x32xf32>
    %cst_15 = arith.constant dense<0.000000e+00> : vector<16xf32>
    %45 = vector.multi_reduction <add>, %44, %cst_15 [1] : vector<16x32xf32> to vector<16xf32>
    %46 = vector.shape_cast %45 : vector<16xf32> to vector<16x1xf32>
    %cst_16 = arith.constant 3.200000e+01 : f32
    %47 = vector.broadcast %cst_16 : f32 to vector<16x1xf32>
    %48 = arith.divf %46, %47 : vector<16x1xf32>
    %49 = vector.broadcast %48 : vector<16x1xf32> to vector<16x32xf32>
    %50 = arith.subf %44, %49 : vector<16x32xf32>
    %51 = vector.broadcast %48 : vector<16x1xf32> to vector<16x32xf32>
    %52 = arith.subf %44, %51 : vector<16x32xf32>
    %53 = arith.mulf %50, %52 : vector<16x32xf32>
    %cst_17 = arith.constant dense<0.000000e+00> : vector<16xf32>
    %54 = vector.multi_reduction <add>, %53, %cst_17 [1] : vector<16x32xf32> to vector<16xf32>
    %55 = vector.shape_cast %54 : vector<16xf32> to vector<16x1xf32>
    %cst_18 = arith.constant 3.200000e+01 : f32
    %56 = vector.broadcast %cst_18 : f32 to vector<16x1xf32>
    %57 = arith.divf %55, %56 : vector<16x1xf32>
    %58 = vector.broadcast %48 : vector<16x1xf32> to vector<16x32xf32>
    %59 = arith.subf %44, %58 : vector<16x32xf32>
    %cst_19 = arith.constant 9.99999974E-6 : f32
    %60 = vector.broadcast %cst_19 : f32 to vector<16x1xf32>
    %61 = arith.addf %57, %60 : vector<16x1xf32>
    %62 = math.rsqrt %61 : vector<16x1xf32>
    %63 = vector.broadcast %62 : vector<16x1xf32> to vector<16x32xf32>
    %64 = arith.mulf %59, %63 : vector<16x32xf32>
    %c0_20 = arith.constant 0 : index
    %c0_21 = arith.constant 0 : index
    %65 = vector.load %arg10[%c0_20, %c0_21] : memref<1x32xf32, #tpu.memory_space<vmem>>, vector<1x32xf32>
    %66 = vector.broadcast %65 : vector<1x32xf32> to vector<16x32xf32>
    %67 = arith.mulf %64, %66 : vector<16x32xf32>
    %c0_22 = arith.constant 0 : index
    %c0_23 = arith.constant 0 : index
    %68 = vector.load %arg11[%c0_22, %c0_23] : memref<1x32xf32, #tpu.memory_space<vmem>>, vector<1x32xf32>
    %69 = vector.broadcast %68 : vector<1x32xf32> to vector<16x32xf32>
    %70 = arith.addf %67, %69 : vector<16x32xf32>
    %71 = arith.truncf %70 : vector<16x32xf32> to vector<16x32xbf16>
    %c0_24 = arith.constant 0 : index
    %c0_25 = arith.constant 0 : index
    %72 = vector.load %arg6[%c0_24, %c0_25] : memref<32x64xbf16, #tpu.memory_space<vmem>>, vector<32x64xbf16>
    %cst_26 = arith.constant dense<0.000000e+00> : vector<16x64xf32>
    %73 = tpu.matmul %71, %72, %cst_26 {dimension_numbers = #tpu.dot_dimension_numbers<[1], [0], [0], [1], [0, 0, 1, 1], [], []>} : vector<16x32xbf16>, vector<32x64xbf16>, vector<16x64xf32> -> vector<16x64xf32>
    %c0_27 = arith.constant 0 : index
    %c0_28 = arith.constant 0 : index
    %74 = vector.load %arg7[%c0_27, %c0_28] : memref<1x64xf32, #tpu.memory_space<vmem>>, vector<1x64xf32>
    %75 = vector.broadcast %74 : vector<1x64xf32> to vector<16x64xf32>
    %76 = arith.addf %73, %75 : vector<16x64xf32>
    %cst_29 = arith.constant 0.000000e+00 : f32
    %77 = vector.broadcast %cst_29 : f32 to vector<16x64xf32>
    %78 = arith.maximumf %76, %77 : vector<16x64xf32>
    %79 = arith.truncf %78 : vector<16x64xf32> to vector<16x64xbf16>
    %c0_30 = arith.constant 0 : index
    %c0_31 = arith.constant 0 : index
    %80 = vector.load %arg8[%c0_30, %c0_31] : memref<64x32xbf16, #tpu.memory_space<vmem>>, vector<64x32xbf16>
    %cst_32 = arith.constant dense<0.000000e+00> : vector<16x32xf32>
    %81 = tpu.matmul %79, %80, %cst_32 {dimension_numbers = #tpu.dot_dimension_numbers<[1], [0], [0], [1], [0, 0, 1, 1], [], []>} : vector<16x64xbf16>, vector<64x32xbf16>, vector<16x32xf32> -> vector<16x32xf32>
    %c0_33 = arith.constant 0 : index
    %c0_34 = arith.constant 0 : index
    %82 = vector.load %arg9[%c0_33, %c0_34] : memref<1x32xf32, #tpu.memory_space<vmem>>, vector<1x32xf32>
    %83 = vector.broadcast %82 : vector<1x32xf32> to vector<16x32xf32>
    %84 = arith.addf %81, %83 : vector<16x32xf32>
    %85 = arith.addf %70, %84 : vector<16x32xf32>
    %cst_35 = arith.constant dense<0.000000e+00> : vector<16xf32>
    %86 = vector.multi_reduction <add>, %85, %cst_35 [1] : vector<16x32xf32> to vector<16xf32>
    %87 = vector.shape_cast %86 : vector<16xf32> to vector<16x1xf32>
    %cst_36 = arith.constant 3.200000e+01 : f32
    %88 = vector.broadcast %cst_36 : f32 to vector<16x1xf32>
    %89 = arith.divf %87, %88 : vector<16x1xf32>
    %90 = vector.broadcast %89 : vector<16x1xf32> to vector<16x32xf32>
    %91 = arith.subf %85, %90 : vector<16x32xf32>
    %92 = vector.broadcast %89 : vector<16x1xf32> to vector<16x32xf32>
    %93 = arith.subf %85, %92 : vector<16x32xf32>
    %94 = arith.mulf %91, %93 : vector<16x32xf32>
    %cst_37 = arith.constant dense<0.000000e+00> : vector<16xf32>
    %95 = vector.multi_reduction <add>, %94, %cst_37 [1] : vector<16x32xf32> to vector<16xf32>
    %96 = vector.shape_cast %95 : vector<16xf32> to vector<16x1xf32>
    %cst_38 = arith.constant 3.200000e+01 : f32
    %97 = vector.broadcast %cst_38 : f32 to vector<16x1xf32>
    %98 = arith.divf %96, %97 : vector<16x1xf32>
    %99 = vector.broadcast %89 : vector<16x1xf32> to vector<16x32xf32>
    %100 = arith.subf %85, %99 : vector<16x32xf32>
    %cst_39 = arith.constant 9.99999974E-6 : f32
    %101 = vector.broadcast %cst_39 : f32 to vector<16x1xf32>
    %102 = arith.addf %98, %101 : vector<16x1xf32>
    %103 = math.rsqrt %102 : vector<16x1xf32>
    %104 = vector.broadcast %103 : vector<16x1xf32> to vector<16x32xf32>
    %105 = arith.mulf %100, %104 : vector<16x32xf32>
    %c0_40 = arith.constant 0 : index
    %c0_41 = arith.constant 0 : index
    %106 = vector.load %arg12[%c0_40, %c0_41] : memref<1x32xf32, #tpu.memory_space<vmem>>, vector<1x32xf32>
    %107 = vector.broadcast %106 : vector<1x32xf32> to vector<16x32xf32>
    %108 = arith.mulf %105, %107 : vector<16x32xf32>
    %c0_42 = arith.constant 0 : index
    %c0_43 = arith.constant 0 : index
    %109 = vector.load %arg13[%c0_42, %c0_43] : memref<1x32xf32, #tpu.memory_space<vmem>>, vector<1x32xf32>
    %110 = vector.broadcast %109 : vector<1x32xf32> to vector<16x32xf32>
    %111 = arith.addf %108, %110 : vector<16x32xf32>
    %112 = vector.shape_cast %111 : vector<16x32xf32> to vector<2x8x32xf32>
    %c0_44 = arith.constant 0 : index
    %c0_45 = arith.constant 0 : index
    %c0_46 = arith.constant 0 : index
    %113 = vector.load %arg14[%c0_44, %c0_45, %c0_46] : memref<2x8x32xf32, #tpu.memory_space<vmem>>, vector<2x8x32xf32>
    tpu.vector_store %arg14[%c0_44, %c0_45, %c0_46], %112 {strides = array<i32>} : memref<2x8x32xf32, #tpu.memory_space<vmem>>, vector<2x8x32xf32>,
    return
  }
  func.func @transform_0(%arg0: i32) -> (i32, i32, i32) {
    %c0_i32 = arith.constant 0 : i32
    %c0_i32_0 = arith.constant 0 : i32
    %c0_i32_1 = arith.constant 0 : i32
    return %arg0, %c0_i32, %c0_i32_0 : i32, i32, i32
  }
  func.func @transform_1(%arg0: i32) -> (i32, i32) {
    %c0_i32 = arith.constant 0 : i32
    %c0_i32_0 = arith.constant 0 : i32
    %c0_i32_1 = arith.constant 0 : i32
    return %c0_i32, %c0_i32_0 : i32, i32
  }
  func.func @transform_2(%arg0: i32) -> (i32, i32) {
    %c0_i32 = arith.constant 0 : i32
    %c0_i32_0 = arith.constant 0 : i32
    %c0_i32_1 = arith.constant 0 : i32
    return %c0_i32, %c0_i32_0 : i32, i32
  }
  func.func @transform_3(%arg0: i32) -> (i32, i32) {
    %c0_i32 = arith.constant 0 : i32
    %c0_i32_0 = arith.constant 0 : i32
    %c0_i32_1 = arith.constant 0 : i32
    return %c0_i32, %c0_i32_0 : i32, i32
  }
  func.func @transform_4(%arg0: i32) -> (i32, i32) {
    %c0_i32 = arith.constant 0 : i32
    %c0_i32_0 = arith.constant 0 : i32
    %c0_i32_1 = arith.constant 0 : i32
    return %c0_i32, %c0_i32_0 : i32, i32
  }
  func.func @transform_5(%arg0: i32) -> (i32, i32) {
    %c0_i32 = arith.constant 0 : i32
    %c0_i32_0 = arith.constant 0 : i32
    %c0_i32_1 = arith.constant 0 : i32
    return %c0_i32, %c0_i32_0 : i32, i32
  }
  func.func @transform_6(%arg0: i32) -> (i32, i32) {
    %c0_i32 = arith.constant 0 : i32
    %c0_i32_0 = arith.constant 0 : i32
    %c0_i32_1 = arith.constant 0 : i32
    return %c0_i32, %c0_i32_0 : i32, i32
  }
  func.func @transform_7(%arg0: i32) -> (i32, i32) {
    %c0_i32 = arith.constant 0 : i32
    %c0_i32_0 = arith.constant 0 : i32
    %c0_i32_1 = arith.constant 0 : i32
    return %c0_i32, %c0_i32_0 : i32, i32
  }
  func.func @transform_8(%arg0: i32) -> (i32, i32) {
    %c0_i32 = arith.constant 0 : i32
    %c0_i32_0 = arith.constant 0 : i32
    %c0_i32_1 = arith.constant 0 : i32
    return %c0_i32, %c0_i32_0 : i32, i32
  }
  func.func @transform_9(%arg0: i32) -> (i32, i32) {
    %c0_i32 = arith.constant 0 : i32
    %c0_i32_0 = arith.constant 0 : i32
    %c0_i32_1 = arith.constant 0 : i32
    return %c0_i32, %c0_i32_0 : i32, i32
  }
  func.func @transform_10(%arg0: i32) -> (i32, i32) {
    %c0_i32 = arith.constant 0 : i32
    %c0_i32_0 = arith.constant 0 : i32
    %c0_i32_1 = arith.constant 0 : i32
    return %c0_i32, %c0_i32_0 : i32, i32
  }
  func.func @transform_11(%arg0: i32) -> (i32, i32) {
    %c0_i32 = arith.constant 0 : i32
    %c0_i32_0 = arith.constant 0 : i32
    %c0_i32_1 = arith.constant 0 : i32
    return %c0_i32, %c0_i32_0 : i32, i32
  }
  func.func @transform_12(%arg0: i32) -> (i32, i32) {
    %c0_i32 = arith.constant 0 : i32
    %c0_i32_0 = arith.constant 0 : i32
    %c0_i32_1 = arith.constant 0 : i32
    return %c0_i32, %c0_i32_0 : i32, i32
  }
  func.func @transform_13(%arg0: i32) -> (i32, i32, i32) {
    %c0_i32 = arith.constant 0 : i32
    %c0_i32_0 = arith.constant 0 : i32
    %c0_i32_1 = arith.constant 0 : i32
    return %arg0, %c0_i32, %c0_i32_0 : i32, i32, i32
  }
}

</mosaic_0001>

<bundles_post_ra>
// kernel: tpu_custom_call.1
= control target key start
LH: loop header
LB: loop body
LE: loop exit
PB: predicated region body
PF: predicated region fallthrough
CT: control target
= control target key end

     0   :  { %18 = vsyncpa [#allocation3], 0  ;;  %s2281_s0 = inlined_call_operand.hbm [shape: bf16[2,8,32], index: 0, kind: input, shape index: {}]   ;;  %s2282_s1 = inlined_call_operand.vmem [shape: bf16[32,96], index: 1, kind: input, shape index: {}]   ;;  %s2283_s2 = inlined_call_operand.vmem [shape: f32[1,96], index: 2, kind: input, shape index: {}]   ;;  %s2284_s3 = inlined_call_operand.vmem [shape: bf16[32,32], index: 3, kind: input, shape index: {}]   ;;  %s2285_s4 = inlined_call_operand.vmem [shape: f32[1,32], index: 4, kind: input, shape index: {}]   ;;  %s2286_s5 = inlined_call_operand.vmem [shape: bf16[32,64], index: 5, kind: input, shape index: {}]   ;;  %s2287_s6 = inlined_call_operand.vmem [shape: f32[1,64], index: 6, kind: input, shape index: {}]   ;;  %s2288_s7 = inlined_call_operand.vmem [shape: bf16[64,32], index: 7, kind: input, shape index: {}]   ;;  %s2289_s8 = inlined_call_operand.vmem [shape: f32[1,32], index: 8, kind: input, shape index: {}]   ;;  %s2290_s9 = inlined_call_operand.vmem [shape: f32[1,32], index: 9, kind: input, shape index: {}]   ;;  %s2291_s10 = inlined_call_operand.vmem [shape: f32[1,32], index: 10, kind: input, shape index: {}]   ;;  %s2292_s11 = inlined_call_operand.vmem [shape: f32[1,32], index: 11, kind: input, shape index: {}]   ;;  %s2293_s12 = inlined_call_operand.vmem [shape: f32[1,32], index: 12, kind: input, shape index: {}]   ;;  %s2294_s13 = inlined_call_operand.hbm [shape: f32[2,8,32], index: 13, kind: output, shape index: {}]  }
   0x1   :  { %19 = vsyncpa [#allocation4], 0  ;;  %s24_s27 = sshll.u32 %s2281_s0, 4  ;;  %s2024_s28 = smov [#allocation2]   ;;  %s25_s27 = int_to_ptr.hbm [resolvable:$true] %s24_s27 }
   0x2   :  { %s26_s29 = sshll.u32 %s2024_s28, 4  ;;  %s2025_s30 = smov 64   ;;  %s27_s29 = int_to_ptr.vmem [resolvable:$true] %s26_s29 }
   0x3   :  { %s2026_s14 = smov 4  }
   0x4   :  { %32 = dma.hbm_to_vmem [thread:$0]  %s25_s27, 128, %s27_s29, [#allocation3], %s2025_s30, %s2025_s30, %s2026_s14  }
   0x5   :  { %2020 = dma.done.wait [#allocation3], 128  }
   0x6   :  { %2021 = vsyncadd [#allocation3], 4294967168  ;;  %v1774_v0 = vld [vmem:[%s2282_s1 + $0x8] sm:$0xff]  ;;  %v1773_v1 = vld [vmem:[%s2282_s1] sm:$0xff]  ;;  %vm91_vm0 = vcmask 261120   ;;  %vm713_vm1 = vcmask 1043456  }
   0x7   :  { %101 = vmatpush.bf16.msra.mxu0 %v1774_v0  ;;  %v1772_v2 = vld [vmem:[#allocation2] sm:$0xff]  ;;  %vm709_vm2 = vcmask 64512   ;;  %vm1611_vm10 = vcmask 523264   ;;  %s1695_s23 = sshll.u32 %s2294_s13, 4  ;;  %s1696_s23 = int_to_ptr.hbm [resolvable:$true] %s1695_s23 }
   0x8   :  { %v1922_v4 = vld [vmem:[%s2283_s2] ss:$0 sm:$0xff] }
   0xb   :  { %102 = vmatpush.bf16.msra.mxu0 %v1773_v1 }
   0xe   :  { %1720 = vmatmul.msk.bf16.vlgmr.msra.gmra.mxu0 %vm91_vm0, %v1772_v2 }
  0x8b   :  { %v104_v3 = vpop.f32.mrf.mxu0 }
  0x8c   :  { %v105_v6 = vadd.f32 %v1922_v4, %v104_v3 }
  0x93   :  { %v106_v5 = vpop.f32.mrf.mxu0 }
  0x94   :  { %v107_v7 = vadd.f32 %v1922_v4, %v106_v5 }
  0x96   :  { %v1791_v8 = vpack.i.bf16 %v107_v7, %v105_v6 }
  0x98   :  { %1792 = vxpose.xlu0.b32.start.end [1/1] (short) (narrow) %v1791_v8, 96 }
 0x13c   :  { %v1793_v9 = vpop.trf.xlu0 }
 0x13d   :  { %v1794_v10 = vunpack.i.l.bf16 %v1793_v9  ;;  %v1797_v13 = vunpack.i.h.bf16 %v1793_v9 }
 0x13f   :  { %173 = vxpose.xlu1.b32.start.end [1/1] (short) (narrow) %v1794_v10, 8 }
 0x144   :  { %v1798_v11 = vpop.trf.xlu0 }
 0x145   :  { %v1802_v12 = vunpack.i.h.bf16 %v1798_v11  ;;  %v1799_v17 = vunpack.i.l.bf16 %v1798_v11 }
 0x147   :  { %v1860_v14 = vpack.i.bf16 %v1802_v12, %v1797_v13 }
 0x149   :  { %1861 = vxpose.xlu1.b32.start.end [1/1] (short) (narrow) %v1860_v14, 8 }
 0x14c   :  { %v1803_v15 = vpop.trf.xlu0 }
 0x14d   :  { %v1804_v16 = vunpack.i.l.bf16 %v1803_v15  ;;  %v1807_v23 = vunpack.i.h.bf16 %v1803_v15 }
 0x14f   :  { %v1853_v18 = vpack.i.bf16 %v1804_v16, %v1799_v17 }
 0x151   :  { %1854 = vxpose.xlu0.b32.start.end [1/1] (short) (narrow) %v1853_v18, 8 }
 0x154   :  { %v1808_v19 = vpop.trf.xlu0 }
 0x155   :  { %v1809_v20 = vunpack.i.l.bf16 %v1808_v19  ;;  %v1812_v21 = vunpack.i.h.bf16 %v1808_v19 }
 0x157   :  { %269 = vxpose.xlu2.b32.start.end [1/1] (short) (narrow) %v1809_v20, 8  ;;  %397 = vxpose.xlu1.b32.start.end [1/1] (short) (narrow) %v1812_v21, 8 }
 0x15c   :  { %v1813_v22 = vpop.trf.xlu0 }
 0x15d   :  { %v1814_v24 = vunpack.i.l.bf16 %v1813_v22  ;;  %v1817_v26 = vunpack.i.h.bf16 %v1813_v22 }
 0x15f   :  { %365 = vxpose.xlu2.b32.start.end [1/1] (short) (narrow) %v1807_v23, 8  ;;  %v701_v25 = vpack.c.bf16 %v1814_v24, %v1814_v24  ;;  %v705_v29 = vpack.c.bf16 %v1817_v26, %v1817_v26 }
 0x161   :  { %v715_v27 = vsel %vm713_vm1, %v701_v25, 0  ;;  %v791_v32 = vsel %vm713_vm1, %v705_v29, 0 }
 0x162   :  { %724 = vmatpush.bf16.msra.mxu1 %v715_v27 }
 0x164   :  { %v1818_v28 = vpop.trf.xlu0 }
 0x165   :  { %v1819_v30 = vunpack.i.l.bf16 %v1818_v28  ;;  %v1822_v33 = vunpack.i.h.bf16 %v1818_v28 }
 0x167   :  { %v702_v31 = vpack.c.bf16 %v1819_v30, %v1819_v30  ;;  %v706_v36 = vpack.c.bf16 %v1822_v33, %v1822_v33 }
 0x169   :  { %v734_v34 = vsel %vm713_vm1, %v702_v31, 0  ;;  %v810_v41 = vsel %vm713_vm1, %v706_v36, 0 }
 0x16a   :  { %743 = vmatpush.bf16.msra.mxu2 %v734_v34 }
 0x16c   :  { %v1823_v35 = vpop.trf.xlu0 }
 0x16d   :  { %v1824_v37 = vunpack.i.l.bf16 %v1823_v35  ;;  %v1827_v38 = vunpack.i.h.bf16 %v1823_v35 }
 0x16e   :  { %800 = vmatpush.bf16.msrb.mxu2 %v791_v32 }
 0x16f   :  { %v703_v39 = vpack.c.bf16 %v1824_v37, %v1824_v37  ;;  %v707_v40 = vpack.c.bf16 %v1827_v38, %v1827_v38 }
 0x171   :  { %v753_v42 = vsel %vm713_vm1, %v703_v39, 0  ;;  %v829_v43 = vsel %vm713_vm1, %v707_v40, 0 }
 0x172   :  { %762 = vmatpush.bf16.msra.mxu3 %v753_v42  ;;  %838 = vmatpush.bf16.msrb.mxu0 %v829_v43 }
 0x174   :  { %v1828_v44 = vpop.trf.xlu0 }
 0x175   :  { %v1829_v45 = vunpack.i.l.bf16 %v1828_v44  ;;  %v1832_v58 = vunpack.i.h.bf16 %v1828_v44 }
 0x176   :  { %819 = vmatpush.bf16.msrb.mxu3 %v810_v41 }
 0x177   :  { %v704_v46 = vpack.c.bf16 %v1829_v45, %v1829_v45  ;;  %v708_v59 = vpack.c.bf16 %v1832_v58, %v1832_v58 }
 0x179   :  { %v772_v47 = vsel %vm713_vm1, %v704_v46, 0  ;;  %v848_v62 = vsel %vm713_vm1, %v708_v59, 0 }
 0x17a   :  { %781 = vmatpush.bf16.msrb.mxu1 %v772_v47 }
 0x17c   :  { %v2121_v48 = vpop.trf.xlu0 }
 0x17d   :  { %v1834_v49 = vunpack.i.l.bf16 %v2121_v48  ;;  %v1837_v40 = vunpack.i.h.bf16 %v2121_v48 }
 0x184   :  { %v2124_v50 = vpop.trf.xlu0 }
 0x185   :  { %v1839_v51 = vunpack.i.l.bf16 %v2124_v50  ;;  %v1842_v42 = vunpack.i.h.bf16 %v2124_v50 }
 0x187   :  { %v1867_v52 = vpack.i.bf16 %v1839_v51, %v1834_v49 }
 0x189   :  { %1868 = vxpose.xlu2.b32.start.end [1/1] (short) (narrow) %v1867_v52, 8 }
 0x18c   :  { %v2127_v53 = vpop.trf.xlu0 }
 0x18d   :  { %v1844_v55 = vunpack.i.l.bf16 %v2127_v53  ;;  %v1847_v45 = vunpack.i.h.bf16 %v2127_v53 }
 0x194   :  { %v2129_v54 = vpop.trf.xlu0 }
 0x195   :  { %v1849_v56 = vunpack.i.l.bf16 %v2129_v54  ;;  %v1852_v46 = vunpack.i.h.bf16 %v2129_v54 }
 0x197   :  { %v2133_v57 = vpack.i.bf16 %v1849_v56, %v1844_v55 }
 0x1e3   :  { %v189_v60 = vpop.trf.xlu1 }
 0x1e4   :  { %v429_v61 = vpack.c.bf16 %v189_v60, %v189_v60 }
 0x1e6   :  { %1721 = vmatmul.msk.bf16.vlgmr.msra.gmra.mxu1 %vm709_vm2, %v429_v61 }
 0x1e7   :  { %857 = vmatpush.bf16.msra.mxu1 %v848_v62 }
 0x1ed   :  { %v1862_v63 = vpop.trf.xlu1 }
 0x1ee   :  { %v1866_v10 = vunpack.i.h.bf16 %v1862_v63  ;;  %v1863_v11 = vunpack.i.l.bf16 %v1862_v63 }
 0x1f0   :  { %v285_v0 = vpop.trf.xlu2  ;;  %v434_v13 = vpack.c.bf16 %v1866_v10, %v1866_v10  ;;  %v433_v14 = vpack.c.bf16 %v1863_v11, %v1863_v11 }
 0x1f1   :  { %v432_v1 = vpack.c.bf16 %v285_v0, %v285_v0 }
 0x1f5   :  { %v1855_v2 = vpop.trf.xlu0 }
 0x1f6   :  { %v1856_v3 = vunpack.i.l.bf16 %v1855_v2  ;;  %v1859_v4 = vunpack.i.h.bf16 %v1855_v2  ;;  %1724 = vmatmul.msk.bf16.vlgmr.msrb.gmra.mxu1 %vm709_vm2, %v432_v1 }
 0x1f8   :  { %v430_v5 = vpack.c.bf16 %v1856_v3, %v1856_v3  ;;  %v431_v6 = vpack.c.bf16 %v1859_v4, %v1859_v4  ;;  %v381_v7 = vpop.trf.xlu2 }
 0x1f9   :  { %v435_v8 = vpack.c.bf16 %v381_v7, %v381_v7 }
 0x1fa   :  { %1722 = vmatmul.msk.bf16.vlgmr.msra.gmra.mxu2 %vm709_vm2, %v430_v5  ;;  %1723 = vmatmul.msk.bf16.vlgmr.msra.gmra.mxu3 %vm709_vm2, %v431_v6 }
 0x1fb   :  { %1727 = vmatmul.msk.bf16.vlgmr.msrb.gmra.mxu0 %vm709_vm2, %v435_v8  ;;  %v413_v9 = vpop.trf.xlu1 }
 0x1fc   :  { %v436_v12 = vpack.c.bf16 %v413_v9, %v413_v9 }
 0x206   :  { %1728 = vmatmul.msk.bf16.vlgmr.msra.gmra.mxu1 %vm709_vm2, %v436_v12 }
 0x20a   :  { %1725 = vmatmul.msk.bf16.vlgmr.msrb.gmra.mxu2 %vm709_vm2, %v433_v14  ;;  %1726 = vmatmul.msk.bf16.vlgmr.msrb.gmra.mxu3 %vm709_vm2, %v434_v13 }
 0x222   :  { %v1869_v39 = vpop.trf.xlu2 }
 0x223   :  { %v1870_v41 = vunpack.i.l.bf16 %v1869_v39  ;;  %v1873_v47 = vunpack.i.h.bf16 %v1869_v39 }
 0x225   :  { %v693_v43 = vpack.c.bf16 %v1870_v41, %v1870_v41  ;;  %v694_v52 = vpack.c.bf16 %v1873_v47, %v1873_v47 }
 0x227   :  { %v947_v44 = vsel %vm713_vm1, %v693_v43, 0  ;;  %v966_v50 = vsel %vm713_vm1, %v694_v52, 0 }
 0x228   :  { %956 = vmatpush.bf16.msra.mxu2 %v947_v44  ;;  %975 = vmatpush.bf16.msra.mxu3 %v966_v50 }
 0x263   :  { %v726_v15 = vpop.f32.mrf.mxu1 }
 0x264   :  { %v863_v16 = vsel %vm709_vm2, %v726_v15, -inf }
 0x265   :  { %864 = vmax.xlane.f32.xlu2 %v863_v16 }
 0x26b   :  { %v728_v17 = vpop.f32.mrf.mxu1 }
 0x273   :  { %v2145_v18 = vpop.f32.mrf.mxu1 }
 0x274   :  { %v872_v27 = vsel %vm709_vm2, %v2145_v18, -inf }
 0x278   :  { %v2147_v19 = vpop.f32.mrf.mxu0 }
 0x279   :  { %v881_v31 = vsel %vm709_vm2, %v2147_v19, -inf }
 0x27b   :  { %v785_v20 = vpop.f32.mrf.mxu1 }
 0x27d   :  { %v745_v21 = vpop.f32.mrf.mxu2  ;;  %v764_v22 = vpop.f32.mrf.mxu3 }
 0x27e   :  { %v869_v23 = vsel %vm709_vm2, %v764_v22, -inf  ;;  %v866_v24 = vsel %vm709_vm2, %v745_v21, -inf }
 0x27f   :  { %870 = vmax.xlane.f32.xlu0 %v869_v23  ;;  %867 = vmax.xlane.f32.xlu1 %v866_v24 }
 0x280   :  { %v842_v25 = vpop.f32.mrf.mxu0 }
 0x283   :  { %v2151_v26 = vpop.f32.mrf.mxu1 }
 0x284   :  { %v884_v38 = vsel %vm709_vm2, %v2151_v26, -inf }
 0x285   :  { %v747_v28 = vpop.f32.mrf.mxu2  ;;  %v766_v29 = vpop.f32.mrf.mxu3 }
 0x287   :  { %873 = vmax.xlane.f32.xlu1 %v872_v27 }
 0x28b   :  { %v861_v30 = vpop.f32.mrf.mxu1 }
 0x28d   :  { %v2157_v32 = vpop.f32.mrf.mxu2  ;;  %v2159_v33 = vpop.f32.mrf.mxu3 }
 0x28e   :  { %v878_v34 = vsel %vm709_vm2, %v2159_v33, -inf  ;;  %v875_v35 = vsel %vm709_vm2, %v2157_v32, -inf }
 0x28f   :  { %882 = vmax.xlane.f32.xlu1 %v881_v31  ;;  %879 = vmax.xlane.f32.xlu2 %v878_v34 }
 0x295   :  { %v804_v36 = vpop.f32.mrf.mxu2  ;;  %v823_v37 = vpop.f32.mrf.mxu3 }
 0x297   :  { %876 = vmax.xlane.f32.xlu1 %v875_v35 }
 0x29f   :  { %885 = vmax.xlane.f32.xlu1 %v884_v38 }
 0x2b8   :  { %565 = vxpose.xlu2.b32.start.end [1/1] (short) (narrow) %v1837_v40, 8 }
 0x2c0   :  { %597 = vxpose.xlu2.b32.start.end [1/1] (short) (narrow) %v1842_v42, 8 }
 0x2c8   :  { %629 = vxpose.xlu2.b32.start.end [1/1] (short) (narrow) %v1847_v45, 8 }
 0x2d0   :  { %661 = vxpose.xlu2.b32.start.end [1/1] (short) (narrow) %v1852_v46, 8 }
 0x2d8   :  { %v865_v49 = vpop.xlane.xlu2 %864 }
 0x2d9   :  { %v887_v51 = vsub.f32 %v726_v15, %v865_v49  ;;  %1875 = vxpose.xlu1.b32.start.end [1/1] (short) (narrow) %v2133_v57, 8 }
 0x2db   :  { %v895_v48 = vmul.f32 1.442695, %v887_v51 }
 0x2dd   :  { %1930 = vpow2.f32 %v895_v48 }
 0x2e3   :  { %v1931_v55 = vpop.eup %1930 }
 0x2e4   :  { %v935_v56 = vpack.c.bf16 %v1931_v55, %v1931_v55  ;;  %v911_v25 = vsel %vm709_vm2, %v1931_v55, 0.0 }
 0x2e6   :  { %1729 = vmatmul.msk.bf16.vlgmr.msra.gmra.mxu2 %vm709_vm2, %v935_v56 }
 0x2f2   :  { %v868_v53 = vpop.xlane.xlu1 %867  ;;  %v871_v58 = vpop.xlane.xlu0 %870 }
 0x2f3   :  { %v888_v59 = vsub.f32 %v745_v21, %v868_v53  ;;  %v889_v60 = vsub.f32 %v764_v22, %v871_v58 }
 0x2f5   :  { %v897_v54 = vmul.f32 1.442695, %v888_v59  ;;  %v899_v61 = vmul.f32 1.442695, %v889_v60 }
 0x2f7   :  { %1932 = vpow2.f32 %v897_v54 }
 0x2f8   :  { %1934 = vpow2.f32 %v899_v61 }
 0x2fa   :  { %v874_v62 = vpop.xlane.xlu1 %873 }
 0x2fb   :  { %v890_v5 = vsub.f32 %v2145_v18, %v874_v62 }
 0x2fd   :  { %v1933_v63 = vpop.eup %1932  ;;  %v901_v7 = vmul.f32 1.442695, %v890_v5 }
 0x2fe   :  { %v936_v57 = vpack.c.bf16 %v1933_v63, %v1933_v63  ;;  %v914_v0 = vsel %vm709_vm2, %v1933_v63, 0.0  ;;  %v2178_v3 = vpop.eup %1934 }
 0x2ff   :  { %915 = vadd.xlane.f32.xlu0 %v914_v0  ;;  %v917_v6 = vsel %vm709_vm2, %v2178_v3, 0.0  ;;  %v937_v52 = vpack.c.bf16 %v2178_v3, %v2178_v3 }
 0x300   :  { %1730 = vmatmul.msk.bf16.vlgmr.msra.gmra.mxu3 %vm709_vm2, %v936_v57 }
 0x302   :  { %v883_v1 = vpop.xlane.xlu1 %882  ;;  %v880_v9 = vpop.xlane.xlu2 %879 }
 0x303   :  { %v893_v2 = vsub.f32 %v2147_v19, %v883_v1  ;;  %v892_v11 = vsub.f32 %v2159_v33, %v880_v9 }
 0x305   :  { %v907_v4 = vmul.f32 1.442695, %v893_v2  ;;  %v905_v13 = vmul.f32 1.442695, %v892_v11 }
 0x307   :  { %1936 = vpow2.f32 %v907_v4  ;;  %918 = vadd.xlane.f32.xlu0 %v917_v6 }
 0x308   :  { %1938 = vpow2.f32 %v901_v7 }
 0x309   :  { %1940 = vpow2.f32 %v905_v13 }
 0x30a   :  { %v877_v8 = vpop.xlane.xlu1 %876 }
 0x30b   :  { %v891_v23 = vsub.f32 %v2157_v32, %v877_v8 }
 0x30d   :  { %v2183_v10 = vpop.eup %1936  ;;  %v903_v24 = vmul.f32 1.442695, %v891_v23 }
 0x30e   :  { %v929_v12 = vsel %vm709_vm2, %v2183_v10, 0.0  ;;  %v1939_v15 = vpop.eup %1938  ;;  %v941_v53 = vpack.c.bf16 %v2183_v10, %v2183_v10 }
 0x30f   :  { %930 = vadd.xlane.f32.xlu0 %v929_v12  ;;  %v920_v17 = vsel %vm709_vm2, %v1939_v15, 0.0  ;;  %v1941_v19 = vpop.eup %1940  ;;  %v938_v50 = vpack.c.bf16 %v1939_v15, %v1939_v15 }
 0x310   :  { %v926_v20 = vsel %vm709_vm2, %v1941_v19, 0.0  ;;  %v940_v35 = vpack.c.bf16 %v1941_v19, %v1941_v19 }
 0x312   :  { %v886_v14 = vpop.xlane.xlu1 %885 }
 0x313   :  { %v894_v16 = vsub.f32 %v2151_v26, %v886_v14 }
 0x315   :  { %v909_v18 = vmul.f32 1.442695, %v894_v16 }
 0x317   :  { %921 = vadd.xlane.f32.xlu0 %v920_v17  ;;  %1942 = vpow2.f32 %v909_v18 }
 0x318   :  { %1944 = vpow2.f32 %v903_v24 }
 0x31d   :  { %v1943_v21 = vpop.eup %1942 }
 0x31e   :  { %v932_v22 = vsel %vm709_vm2, %v1943_v21, 0.0  ;;  %v1945_v26 = vpop.eup %1944  ;;  %v942_v58 = vpack.c.bf16 %v1943_v21, %v1943_v21 }
 0x31f   :  { %927 = vadd.xlane.f32.xlu0 %v926_v20  ;;  %v923_v27 = vsel %vm709_vm2, %v1945_v26, 0.0  ;;  %v939_v31 = vpack.c.bf16 %v1945_v26, %v1945_v26 }
 0x327   :  { %933 = vadd.xlane.f32.xlu0 %v932_v22 }
 0x339   :  { %912 = vadd.xlane.f32.xlu1 %v911_v25 }
 0x341   :  { %924 = vadd.xlane.f32.xlu2 %v923_v27 }
 0x351   :  { %v581_v28 = vpop.trf.xlu2 }
 0x352   :  { %v697_v29 = vpack.c.bf16 %v581_v28, %v581_v28 }
 0x354   :  { %v1023_v30 = vsel %vm713_vm1, %v697_v29, 0 }
 0x355   :  { %1032 = vmatpush.bf16.msrb.mxu2 %v1023_v30 }
 0x358   :  { %1733 = vmatmul.msk.bf16.vlgmr.msrb.gmra.mxu2 %vm709_vm2, %v939_v31 }
 0x359   :  { %v613_v33 = vpop.trf.xlu2 }
 0x35a   :  { %v698_v34 = vpack.c.bf16 %v613_v33, %v613_v33 }
 0x35c   :  { %v1042_v32 = vsel %vm713_vm1, %v698_v34, 0 }
 0x35d   :  { %1051 = vmatpush.bf16.msrb.mxu3 %v1042_v32  ;;  %v1776_v32 = vld [vmem:[%s2284_s3 + $0x8] sm:$0xff] }
 0x35e   :  { %1461 = vmatpush.bf16.msra.mxu2 %v1776_v32 }
 0x360   :  { %1734 = vmatmul.msk.bf16.vlgmr.msrb.gmra.mxu3 %vm709_vm2, %v940_v35 }
 0x361   :  { %v645_v37 = vpop.trf.xlu2 }
 0x362   :  { %v699_v41 = vpack.c.bf16 %v645_v37, %v645_v37 }
 0x364   :  { %v1061_v47 = vsel %vm713_vm1, %v699_v41, 0 }
 0x369   :  { %v958_v36 = vpop.f32.mrf.mxu2  ;;  %v677_v39 = vpop.trf.xlu2 }
 0x36a   :  { %v700_v42 = vpack.c.bf16 %v677_v39, %v677_v39 }
 0x36c   :  { %v1080_v49 = vsel %vm713_vm1, %v700_v42, 0 }
 0x371   :  { %v960_v38 = vpop.f32.mrf.mxu2 }
 0x372   :  { %v916_v60 = vpop.xlane.xlu0 %915  ;;  %v1775_v38 = vld [vmem:[%s2284_s3] sm:$0xff]  ;;  %s2030_s3 = smov 8  }
 0x373   :  { %1462 = vmatpush.bf16.msra.mxu2 %v1775_v38 }
 0x37a   :  { %v919_v2 = vpop.xlane.xlu0 %918 }
 0x37d   :  { %v1876_v40 = vpop.trf.xlu1 }
 0x37e   :  { %v1880_v43 = vunpack.i.h.bf16 %v1876_v40  ;;  %v1877_v44 = vunpack.i.l.bf16 %v1876_v40 }
 0x380   :  { %v695_v45 = vpack.c.bf16 %v1877_v44, %v1877_v44  ;;  %v696_v46 = vpack.c.bf16 %v1880_v43, %v1880_v43  ;;  %v62_v43 = vld [vmem:[#allocation2] sm:$0xff]  }
 0x381   :  { %v1923_v44 = vld [vmem:[%s2285_s4] ss:$0 sm:$0xff] }
 0x382   :  { %v985_v51 = vsel %vm713_vm1, %v695_v45, 0  ;;  %v1004_v48 = vsel %vm713_vm1, %v696_v46, 0  ;;  %v931_v6 = vpop.xlane.xlu0 %930  ;;  %v64_v45 = vunpack.c.l.bf16 %v62_v43 }
 0x383   :  { %994 = vmatpush.bf16.msra.mxu0 %v985_v51  ;;  %1013 = vmatpush.bf16.msrb.mxu1 %v1004_v48  ;;  %v977_v55 = vpop.f32.mrf.mxu3  ;;  %v65_v48 = vunpack.c.h.bf16 %v62_v43 }
 0x386   :  { %1731 = vmatmul.msk.bf16.vlgmr.msra.gmra.mxu0 %vm709_vm2, %v937_v52  ;;  %1732 = vmatmul.msk.bf16.vlgmr.msrb.gmra.mxu1 %vm709_vm2, %v938_v50 }
 0x387   :  { %1070 = vmatpush.bf16.msrb.mxu0 %v1061_v47  ;;  %1089 = vmatpush.bf16.msra.mxu1 %v1080_v49 }
 0x38a   :  { %v922_v7 = vpop.xlane.xlu0 %921 }
 0x38b   :  { %v979_v56 = vpop.f32.mrf.mxu3 }
 0x392   :  { %v928_v8 = vpop.xlane.xlu0 %927 }
 0x396   :  { %1735 = vmatmul.msk.bf16.vlgmr.msrb.gmra.mxu0 %vm709_vm2, %v941_v53  ;;  %1736 = vmatmul.msk.bf16.vlgmr.msra.gmra.mxu1 %vm709_vm2, %v942_v58  ;;  %v2027_v53 = vmov 32.0  }
 0x39a   :  { %v934_v11 = vpop.xlane.xlu0 %933 }
 0x3ac   :  { %v913_v59 = vpop.xlane.xlu1 %912 }
 0x3ad   :  { %1946 = vrcp.f32 %v913_v59 }
 0x3b3   :  { %v1947_v61 = vpop.eup %1946 }
 0x3b4   :  { %v925_v54 = vpop.xlane.xlu2 %924  ;;  %v1103_v57 = vmul.f32 %v1947_v61, %v958_v36 }
 0x3b5   :  { %1948 = vrcp.f32 %v925_v54 }
 0x3b6   :  { %1950 = vrcp.f32 %v919_v2 }
 0x3b7   :  { %1952 = vrcp.f32 %v931_v6 }
 0x3b8   :  { %1954 = vrcp.f32 %v922_v7 }
 0x3b9   :  { %1956 = vrcp.f32 %v934_v11 }
 0x3ba   :  { %1958 = vrcp.f32 %v928_v8  ;;  %v1778_v8 = vld [vmem:[%s2286_s5 + $0x8] sm:$0xff] }
 0x3bb   :  { %v1949_v62 = vpop.eup %1948  ;;  %1960 = vrcp.f32 %v916_v60  ;;  %1564 = vmatpush.bf16.msra.mxu3 %v1778_v8 }
 0x3bc   :  { %v1951_v14 = vpop.eup %1950  ;;  %1962 = vrcp.f32 %v2027_v53 }
 0x3bd   :  { %v1953_v15 = vpop.eup %1952 }
 0x3be   :  { %v1955_v16 = vpop.eup %1954 }
 0x3bf   :  { %v1957_v17 = vpop.eup %1956 }
 0x3c0   :  { %v1959_v26 = vpop.eup %1958 }
 0x3c1   :  { %v1961_v28 = vpop.eup %1960 }
 0x3c2   :  { %v1104_v31 = vmul.f32 %v1961_v28, %v977_v55  ;;  %v1963_v58 = vpop.eup %1962  ;;  %v1924_v28 = vld [vmem:[%s2290_s9] ss:$0 sm:$0xff] }
 0x3c3   :  { %v1478_v59 = vmul.f32 32.0, %v1963_v58  ;;  %vm1482_vm3 = vweird.f32 %v1963_v58 }
 0x3c5   :  { %v1479_v54 = vsub.f32 1.0, %v1478_v59 }
 0x3c7   :  { %v1480_v60 = vmul.f32 %v1963_v58, %v1479_v54 }
 0x3c9   :  { %v1481_v61 = vadd.f32 %v1963_v58, %v1480_v60 }
 0x3db   :  { %v1034_v63 = vpop.f32.mrf.mxu2 }
 0x3dc   :  { %v1107_v0 = vmul.f32 %v1949_v62, %v1034_v63  ;;  %v2223_v62 = vsel %vm1482_vm3, %v1963_v58, %v1481_v61 }
 0x3de   :  { %v1881_v1 = vpack.i.bf16 %v1107_v0, %v1103_v57 }
 0x3e0   :  { %1882 = vxpose.xlu0.b32.start.end [1/1] (short) (narrow) %v1881_v1, 8 }
 0x3e3   :  { %v1036_v3 = vpop.f32.mrf.mxu2  ;;  %v1053_v4 = vpop.f32.mrf.mxu3 }
 0x3e4   :  { %v1108_v27 = vmul.f32 %v1959_v26, %v1053_v4 }
 0x3e6   :  { %v1902_v33 = vpack.i.bf16 %v1108_v27, %v1104_v31 }
 0x3eb   :  { %v1055_v5 = vpop.f32.mrf.mxu3 }
 0x403   :  { %v996_v9 = vpop.f32.mrf.mxu0  ;;  %v1015_v10 = vpop.f32.mrf.mxu1 }
 0x404   :  { %v1105_v20 = vmul.f32 %v1951_v14, %v996_v9  ;;  %v1106_v21 = vmul.f32 %v1955_v16, %v1015_v10 }
 0x40b   :  { %v998_v12 = vpop.f32.mrf.mxu0  ;;  %v1017_v13 = vpop.f32.mrf.mxu1 }
 0x40c   :  { %v1777_v12 = vld [vmem:[%s2286_s5] sm:$0xff] }
 0x40d   :  { %1565 = vmatpush.bf16.msra.mxu3 %v1777_v12 }
 0x413   :  { %v1072_v18 = vpop.f32.mrf.mxu0  ;;  %v1091_v19 = vpop.f32.mrf.mxu1 }
 0x414   :  { %v1109_v22 = vmul.f32 %v1953_v15, %v1072_v18  ;;  %v1110_v23 = vmul.f32 %v1957_v17, %v1091_v19 }
 0x416   :  { %v1888_v24 = vpack.i.bf16 %v1109_v22, %v1105_v20  ;;  %v1895_v25 = vpack.i.bf16 %v1110_v23, %v1106_v21 }
 0x418   :  { %1889 = vxpose.xlu1.b32.start.end [1/1] (short) (narrow) %v1888_v24, 8  ;;  %1896 = vxpose.xlu0.b32.start.end [1/1] (short) (narrow) %v1895_v25, 8 }
 0x41b   :  { %v1074_v29 = vpop.f32.mrf.mxu0  ;;  %v1093_v30 = vpop.f32.mrf.mxu1 }
 0x420   :  { %1903 = vxpose.xlu0.b32.start.end [1/1] (short) (narrow) %v1902_v33, 8  ;;  %v1925_v33 = vld [vmem:[%s2291_s10] ss:$0 sm:$0xff] }
 0x484   :  { %v1883_v34 = vpop.trf.xlu0 }
 0x485   :  { %1910 = vxpose.xlu0.b32.start [1/4] (short) (narrow) %v1883_v34, 8 }
 0x4bc   :  { %v1897_v35 = vpop.trf.xlu0  ;;  %v1890_v36 = vpop.trf.xlu1 }
 0x4c4   :  { %v1904_v37 = vpop.trf.xlu0 }
 0x4c5   :  { %1912 = vxpose.xlu0.b32.cont [2/4] (short) (narrow) %v1904_v37, 8 }
 0x4cd   :  { %1914 = vxpose.xlu0.b32.cont [3/4] (short) (narrow) %v1890_v36, 8 }
 0x4d5   :  { %1916 = vxpose.xlu0.b32.end [4/4] (short) (narrow) %v1897_v35, 8 }
 0x561   :  { %v1917_v39 = vpop.trf.xlu0 }
 0x562   :  { %v1921_v40 = vunpack.i.h.bf16 %v1917_v39  ;;  %v1918_v41 = vunpack.i.l.bf16 %v1917_v39  ;;  %v1782_v39 = vld [vmem:[%s2288_s7 + $0x18] sm:$0xff] }
 0x563   :  { %1619 = vmatpush.bf16.msra.mxu0 %v1782_v39 }
 0x564   :  { %v1431_v42 = vpack.c.bf16 %v1921_v40, %v1918_v41  ;;  %v1781_v40 = vld [vmem:[%s2288_s7 + $0x10] sm:$0xff]  ;;  %v1780_v41 = vld [vmem:[%s2288_s7 + $0x8] sm:$0xff] }
 0x566   :  { %1745 = vmatmul.msk.bf16.vlgmr.msra.gmra.mxu2 %vm91_vm0, %v1431_v42  ;;  %v1779_v42 = vld [vmem:[%s2288_s7] sm:$0xff] }
 0x567   :  { %1620 = vmatpush.bf16.msra.mxu0 %v1781_v40 }
 0x56b   :  { %1621 = vmatpush.bf16.msra.mxu0 %v1780_v41 }
 0x56f   :  { %1622 = vmatpush.bf16.msra.mxu0 %v1779_v42 }
 0x5e9   :  { %v1464_v46 = vpop.f32.mrf.mxu2 }
 0x5ea   :  { %v1465_v47 = vadd.f32 %v1923_v44, %v1464_v46 }
 0x5ec   :  { %v1469_v49 = vadd.f32 %v1465_v47, %v64_v45 }
 0x5ee   :  { %v1471_v51 = vsel %vm91_vm0, %v1469_v49, 0.0 }
 0x5ef   :  { %1472 = vadd.xlane.f32.xlu2 %v1471_v51 }
 0x5f1   :  { %v1466_v52 = vpop.f32.mrf.mxu2 }
 0x5f2   :  { %v1467_v50 = vadd.f32 %v1923_v44, %v1466_v52  ;;  %v1926_v44 = vld [vmem:[%s2287_s6] ss:$0 sm:$0xff] }
 0x5f3   :  { %v1927_v52 = vld [vmem:[%s2289_s8] ss:$0 sm:$0xff] }
 0x5f4   :  { %v1470_v55 = vadd.f32 %v1467_v50, %v65_v48 }
 0x5f6   :  { %v1474_v56 = vsel %vm91_vm0, %v1470_v55, 0.0 }
 0x5f7   :  { %1475 = vadd.xlane.f32.xlu2 %v1474_v56 }
 0x662   :  { %v1473_v63 = vpop.xlane.xlu2 %1472 }
 0x663   :  { %v1484_v57 = vmul.f32 %v2223_v62, %v1473_v63 }
 0x665   :  { %v1486_v0 = vsub.f32 %v1469_v49, %v1484_v57 }
 0x667   :  { %v1488_v1 = vmul.f32 %v1486_v0, %v1486_v0 }
 0x669   :  { %v1490_v2 = vsel %vm91_vm0, %v1488_v1, 0.0 }
 0x66a   :  { %1491 = vadd.xlane.f32.xlu2 %v1490_v2  ;;  %v1476_v3 = vpop.xlane.xlu2 %1475 }
 0x66b   :  { %v1485_v4 = vmul.f32 %v2223_v62, %v1476_v3 }
 0x66d   :  { %v1487_v5 = vsub.f32 %v1470_v55, %v1485_v4 }
 0x66f   :  { %v1489_v6 = vmul.f32 %v1487_v5, %v1487_v5 }
 0x671   :  { %v1493_v7 = vsel %vm91_vm0, %v1489_v6, 0.0 }
 0x672   :  { %1494 = vadd.xlane.f32.xlu2 %v1493_v7 }
 0x6dd   :  { %v1492_v9 = vpop.xlane.xlu2 %1491 }
 0x6de   :  { %v1496_v10 = vmul.f32 %v1492_v9, %v2223_v62 }
 0x6e0   :  { %v1498_v11 = vadd.f32 1e-05, %v1496_v10 }
 0x6e2   :  { %1964 = vrsqrt.f32 %v1498_v11  ;;  %vm1506_vm5 = vweird.f32 %v1498_v11 }
 0x6e5   :  { %v1495_v13 = vpop.xlane.xlu2 %1494 }
 0x6e6   :  { %v1497_v14 = vmul.f32 %v1495_v13, %v2223_v62 }
 0x6e8   :  { %v1965_v15 = vpop.eup %1964  ;;  %v1499_v16 = vadd.f32 1e-05, %v1497_v14 }
 0x6e9   :  { %v1501_v17 = vmul.f32 %v1965_v15, %v1498_v11  ;;  %vm1507_vm4 = vweird.f32 %v1965_v15 }
 0x6ea   :  { %1966 = vrsqrt.f32 %v1499_v16  ;;  %vm1508_vm6 = vmor %vm1506_vm5, %vm1507_vm4  ;;  %vm1516_vm8 = vweird.f32 %v1499_v16 }
 0x6eb   :  { %v1502_v18 = vmul.f32 %v1965_v15, %v1501_v17 }
 0x6ed   :  { %v1503_v19 = vmul.f32 0.5, %v1502_v18 }
 0x6ef   :  { %v1504_v20 = vsub.f32 1.5, %v1503_v19 }
 0x6f0   :  { %v1967_v21 = vpop.eup %1966 }
 0x6f1   :  { %v1505_v22 = vmul.f32 %v1965_v15, %v1504_v20  ;;  %v1511_v23 = vmul.f32 %v1967_v21, %v1499_v16  ;;  %vm1517_vm7 = vweird.f32 %v1967_v21 }
 0x6f2   :  { %vm1518_vm9 = vmor %vm1516_vm8, %vm1517_vm7 }
 0x6f3   :  { %v1512_v24 = vmul.f32 %v1967_v21, %v1511_v23  ;;  %v1509_v25 = vsel %vm1508_vm6, %v1965_v15, %v1505_v22 }
 0x6f4   :  { %v1520_v29 = vmul.f32 %v1509_v25, %v1486_v0 }
 0x6f5   :  { %v1513_v26 = vmul.f32 0.5, %v1512_v24 }
 0x6f6   :  { %v1526_v34 = vmul.f32 %v1924_v28, %v1520_v29 }
 0x6f7   :  { %v1514_v27 = vsub.f32 1.5, %v1513_v26 }
 0x6f8   :  { %v1532_v36 = vadd.f32 %v1925_v33, %v1526_v34 }
 0x6f9   :  { %v1515_v30 = vmul.f32 %v1967_v21, %v1514_v27 }
 0x6fb   :  { %v1519_v31 = vsel %vm1518_vm9, %v1967_v21, %v1515_v30  ;;  %v1928_v21 = vld [vmem:[%s2292_s11] ss:$0 sm:$0xff]  ;;  %s2028_s11 = smov [#allocation5]  }
 0x6fc   :  { %v1521_v32 = vmul.f32 %v1519_v31, %v1487_v5  ;;  %s1693_s20 = sshll.u32 %s2028_s11, 4  ;;  %s1694_s20 = int_to_ptr.vmem [resolvable:$true] %s1693_s20 }
 0x6fe   :  { %v1527_v35 = vmul.f32 %v1924_v28, %v1521_v32 }
 0x700   :  { %v1533_v37 = vadd.f32 %v1925_v33, %v1527_v35 }
 0x702   :  { %v1534_v38 = vpack.c.bf16 %v1533_v37, %v1532_v36 }
 0x704   :  { %1754 = vmatmul.msk.bf16.vlgmr.msra.gmra.mxu3 %vm91_vm0, %v1534_v38 }
 0x787   :  { %v1567_v43 = vpop.f32.mrf.mxu3 }
 0x788   :  { %v1568_v45 = vadd.f32 %v1926_v44, %v1567_v43 }
 0x78a   :  { %v1572_v49 = vmax.f32 %v1568_v45, 0.0 }
 0x78f   :  { %v1569_v46 = vpop.f32.mrf.mxu3 }
 0x790   :  { %v1570_v47 = vadd.f32 %v1926_v44, %v1569_v46 }
 0x792   :  { %v1573_v51 = vmax.f32 %v1570_v47, 0.0 }
 0x794   :  { %v1574_v48 = vpack.c.bf16 %v1573_v51, %v1572_v49 }
 0x796   :  { %1771 = vmatmul.msk.bf16.vlgmr.msra.gmra.mxu0 %vm1611_vm10, %v1574_v48 }
 0x813   :  { %v1624_v50 = vpop.f32.mrf.mxu0 }
 0x814   :  { %v1625_v55 = vadd.f32 %v1927_v52, %v1624_v50 }
 0x816   :  { %v1629_v56 = vadd.f32 %v1625_v55, %v1532_v36 }
 0x818   :  { %v1631_v53 = vsel %vm91_vm0, %v1629_v56, 0.0 }
 0x819   :  { %1632 = vadd.xlane.f32.xlu0 %v1631_v53 }
 0x81b   :  { %v1626_v58 = vpop.f32.mrf.mxu0 }
 0x81c   :  { %v1627_v59 = vadd.f32 %v1927_v52, %v1626_v58 }
 0x81e   :  { %v1630_v54 = vadd.f32 %v1627_v59, %v1533_v37 }
 0x820   :  { %v1634_v60 = vsel %vm91_vm0, %v1630_v54, 0.0 }
 0x821   :  { %1635 = vadd.xlane.f32.xlu2 %v1634_v60 }
 0x88c   :  { %v1633_v61 = vpop.xlane.xlu0 %1632 }
 0x88d   :  { %v1637_v63 = vmul.f32 %v1633_v61, %v2223_v62 }
 0x88f   :  { %v1639_v57 = vsub.f32 %v1629_v56, %v1637_v63 }
 0x891   :  { %v1641_v0 = vmul.f32 %v1639_v57, %v1639_v57 }
 0x893   :  { %v1643_v1 = vsel %vm91_vm0, %v1641_v0, 0.0 }
 0x894   :  { %v1636_v2 = vpop.xlane.xlu2 %1635  ;;  %1644 = vadd.xlane.f32.xlu2 %v1643_v1 }
 0x895   :  { %v1638_v3 = vmul.f32 %v1636_v2, %v2223_v62 }
 0x897   :  { %v1640_v4 = vsub.f32 %v1630_v54, %v1638_v3 }
 0x899   :  { %v1642_v5 = vmul.f32 %v1640_v4, %v1640_v4 }
 0x89b   :  { %v1646_v6 = vsel %vm91_vm0, %v1642_v5, 0.0 }
 0x89c   :  { %1647 = vadd.xlane.f32.xlu1 %v1646_v6 }
 0x907   :  { %v1645_v7 = vpop.xlane.xlu2 %1644 }
 0x908   :  { %v1649_v8 = vmul.f32 %v1645_v7, %v2223_v62 }
 0x90a   :  { %v1651_v9 = vadd.f32 1e-05, %v1649_v8 }
 0x90c   :  { %1968 = vrsqrt.f32 %v1651_v9  ;;  %vm1659_vm12 = vweird.f32 %v1651_v9 }
 0x90f   :  { %v1648_v10 = vpop.xlane.xlu1 %1647 }
 0x910   :  { %v1650_v11 = vmul.f32 %v1648_v10, %v2223_v62  ;;  %v1929_v62 = vld [vmem:[%s2293_s12] ss:$0 sm:$0xff]  ;;  %s2029_s12 = smov 128  }
 0x912   :  { %v1969_v12 = vpop.eup %1968  ;;  %v1652_v13 = vadd.f32 1e-05, %v1650_v11 }
 0x913   :  { %v1654_v14 = vmul.f32 %v1969_v12, %v1651_v9  ;;  %vm1660_vm11 = vweird.f32 %v1969_v12 }
 0x914   :  { %1970 = vrsqrt.f32 %v1652_v13  ;;  %vm1661_vm13 = vmor %vm1659_vm12, %vm1660_vm11  ;;  %vm1669_vm15 = vweird.f32 %v1652_v13 }
 0x915   :  { %v1655_v15 = vmul.f32 %v1969_v12, %v1654_v14 }
 0x917   :  { %v1656_v16 = vmul.f32 0.5, %v1655_v15 }
 0x919   :  { %v1657_v17 = vsub.f32 1.5, %v1656_v16 }
 0x91a   :  { %v1971_v18 = vpop.eup %1970 }
 0x91b   :  { %v1658_v19 = vmul.f32 %v1969_v12, %v1657_v17  ;;  %v1664_v20 = vmul.f32 %v1971_v18, %v1652_v13  ;;  %vm1670_vm14 = vweird.f32 %v1971_v18 }
 0x91c   :  { %vm1671_vm1 = vmor %vm1669_vm15, %vm1670_vm14 }
 0x91d   :  { %v1662_v22 = vsel %vm1661_vm13, %v1969_v12, %v1658_v19  ;;  %v1665_v23 = vmul.f32 %v1971_v18, %v1664_v20 }
 0x91e   :  { %v1673_v24 = vmul.f32 %v1662_v22, %v1639_v57 }
 0x91f   :  { %v1666_v25 = vmul.f32 0.5, %v1665_v23 }
 0x920   :  { %v1679_v26 = vmul.f32 %v1928_v21, %v1673_v24 }
 0x921   :  { %v1667_v27 = vsub.f32 1.5, %v1666_v25 }
 0x922   :  { %v1685_v28 = vadd.f32 %v1929_v62, %v1679_v26 }
 0x923   :  { %v1668_v29 = vmul.f32 %v1971_v18, %v1667_v27 }
 0x924   :  { %1687 = vst.msk [vmem:[#allocation5] sm:$0xff] %vm91_vm0, %v1685_v28 }
 0x925   :  { %v1672_v30 = vsel %vm1671_vm1, %v1971_v18, %v1668_v29 }
 0x926   :  { %v1674_v31 = vmul.f32 %v1672_v30, %v1640_v4 }
 0x928   :  { %v1680_v33 = vmul.f32 %v1928_v21, %v1674_v31 }
 0x92a   :  { %v1686_v34 = vadd.f32 %v1929_v62, %v1680_v33 }
 0x92c   :  { %1688 = vst.msk [vmem:[#allocation5 + $0x8] sm:$0xff] %vm91_vm0, %v1686_v34 }
 0x92d   :  { %1701 = dma.vmem_to_hbm [thread:$0]  %s1694_s20, 256, %s1696_s23, [#allocation4], %s2029_s12, %s2029_s12, %s2030_s3  }
 0x92e   :  { %2022 = dma.done.wait [#allocation4], 256  }
 0x92f   :  { %2023 = vsyncadd [#allocation4], 4294967040 }
 0x930   :  { %1706 = vsyncpa [#allocation3], 1 }
 0x931   :  { %1707 = vsyncpa [#allocation4], 1 }

</bundles_post_ra>
